<compile_context>
chip_gen: v7x
topology: tpu7x:2x2x1
jax: 0.10.0
libtpu: 0.0.40
codegen_flags: <defaults>
</compile_context>

<pallas_src>
import functools

import jax
import jax.numpy as jnp
import numpy as np
from jax.experimental import pallas as pl
from jax.experimental.pallas import tpu as pltpu

_NEG_BIG = -1e30      # finite "minus infinity" for masked logits (scores stay f32)
_DENOM_EPS = 1e-20    # guards zero-in-degree rows (e.g. padding) against 0-division


def _round_up(x, m):
    return ((x + m - 1) // m) * m


def _proj_kernel(h_ref, w_ref, a_ref, z_ref, s_ref):
    """Head-packed projection + attention scores for one tile of nodes.

    h_ref : (Tn, in_dim)  f32
    w_ref : (in_dim, H*D) f32   packed per-head fc weights (already transposed)
    a_ref : (H*D, 2H)     f32   block-diagonal attn_fc weights: cols [0:H]=dst, [H:2H]=src
    z_ref : (Tn, H*D)     bf16  packed projected features
    s_ref : (Tn, 2H)      f32   per-head scores: [:, :H] = a_dst.z, [:, H:] = a_src.z
    """
    h = h_ref[...].astype(jnp.float32)
    z = jnp.dot(h, w_ref[...], preferred_element_type=jnp.float32)       # (Tn, H*D)
    s_ref[...] = jnp.dot(z, a_ref[...], preferred_element_type=jnp.float32)
    z_ref[...] = z.astype(z_ref.dtype)


def _attn_kernel(sdst_ref, ssrct_ref, adj_ref, zsrc_ref, out_ref,
                 m_ref, l_ref, acc_ref, *, num_heads, head_dim):
    """Flash-style GAT attention over one (dst_tile, src_tile) block, all heads.

    sdst_ref  : (Td, H)    f32   a_dst . z  for the destination tile
    ssrct_ref : (H, Ts)    f32   a_src . z  for the source tile (head-major rows)
    adj_ref   : (Td, Ts)   bf16  adjacency mask adj[dst, src]
    zsrc_ref  : (Ts, H*D)  bf16  packed projected features of the source tile
    out_ref   : (Td, H*D)  f32   concatenated head outputs (resident across src axis)
    m/l_ref   : (H, Td, 1) f32   running max / denominator
    acc_ref   : (H, Td, D) f32   running weighted sum
    """
    j = pl.program_id(1)

    @pl.when(j == 0)
    def _init():
        m_ref[...] = jnp.full_like(m_ref, _NEG_BIG)
        l_ref[...] = jnp.zeros_like(l_ref)
        acc_ref[...] = jnp.zeros_like(acc_ref)

    mask = adj_ref[...] > 0                                  # (Td, Ts) bool
    sdst = sdst_ref[...]                                     # (Td, H)  f32
    ssrc = ssrct_ref[...]                                    # (H, Ts)  f32
    zsrc = zsrc_ref[...]                                     # (Ts, H*D)

    for hd in range(num_heads):                              # static, small
        # e[dst, src] = leaky_relu(a_dst.z[dst] + a_src.z[src]); edges only.
        e = sdst[:, hd:hd + 1] + ssrc[hd:hd + 1, :]          # (Td, Ts)
        e = jnp.maximum(e, 0.01 * e)                         # leaky_relu, slope 0.01
        e = jnp.where(mask, e, _NEG_BIG)

        m_prev = m_ref[hd]                                   # (Td, 1)
        m_new = jnp.maximum(m_prev, jnp.max(e, axis=-1, keepdims=True))
        corr = jnp.exp(m_prev - m_new)                       # (Td, 1)
        p = jnp.where(mask, jnp.exp(e - m_new), 0.0)         # (Td, Ts) f32

        l_ref[hd] = corr * l_ref[hd] + jnp.sum(p, axis=-1, keepdims=True)
        m_ref[hd] = m_new

        z_h = zsrc[:, hd * head_dim:(hd + 1) * head_dim]     # (Ts, D)
        acc_ref[hd] = corr * acc_ref[hd] + jnp.dot(
            p.astype(z_h.dtype), z_h, preferred_element_type=jnp.float32)

    @pl.when(j == pl.num_programs(1) - 1)
    def _finalize():
        outs = []
        for hd in range(num_heads):
            inv = pl.reciprocal(jnp.maximum(l_ref[hd], _DENOM_EPS), approx=True)
            outs.append(acc_ref[hd] * inv)                   # (Td, D)
        out_ref[...] = jnp.concatenate(outs, axis=-1).astype(out_ref.dtype)


def multi_head_gat(h, adj, fc_w, attn_w, merge="cat", *, tile=128,
                   agg_dtype=jnp.bfloat16, vmem_limit_bytes=48 * 1024 * 1024):
    """
    h      : (N, in_dim)            node features
    adj    : (N, N)                 adj[dst, src] in {0,1}
    fc_w   : (H, out_dim, in_dim)   per-head nn.Linear weights (PyTorch layout)
    attn_w : (H, 1, 2*out_dim)      per-head attn_fc weights (PyTorch layout)
    """
    assert tile % 128 == 0
    N, in_dim = h.shape
    H, out_dim, _ = fc_w.shape
    hdim = H * out_dim

    # ---- parameter plumbing (tiny, plain JAX) ----
    # W_all[:, h*D:(h+1)*D] = fc_w[h].T  ->  h @ W_all packs all heads (lane-dense).
    w_all = jnp.transpose(fc_w, (2, 0, 1)).reshape(in_dim, hdim).astype(jnp.float32)
    a = attn_w.reshape(H, 2 * out_dim).astype(jnp.float32)
    a_src, a_dst = a[:, :out_dim], a[:, out_dim:]            # cat([z_src, z_dst]) order
    eye = jnp.eye(H, dtype=jnp.float32)
    a_dst_m = (a_dst[:, :, None] * eye[:, None, :]).reshape(hdim, H)
    a_src_m = (a_src[:, :, None] * eye[:, None, :]).reshape(hdim, H)
    a_pair = jnp.concatenate([a_dst_m, a_src_m], axis=1)     # (H*D, 2H)

    # ---- pad node count to a multiple of the tile size ----
    n_pad = _round_up(N, tile)
    h_f = h.astype(jnp.float32)
    adj_b = adj.astype(jnp.bfloat16)                         # mask only -> bf16 is exact
    if n_pad != N:
        h_f = jnp.pad(h_f, ((0, n_pad - N), (0, 0)))
        adj_b = jnp.pad(adj_b, ((0, n_pad - N), (0, n_pad - N)))

    cparams = pltpu.CompilerParams(
        dimension_semantics=("parallel",),
        vmem_limit_bytes=vmem_limit_bytes,
    )

    # ---- kernel A: head-packed projection + attention scores ----
    z_all, s_pair = pl.pallas_call(
        _proj_kernel,
        out_shape=(jax.ShapeDtypeStruct((n_pad, hdim), agg_dtype),
                   jax.ShapeDtypeStruct((n_pad, 2 * H), jnp.float32)),
        grid_spec=pltpu.PrefetchScalarGridSpec(
            num_scalar_prefetch=0,
            grid=(n_pad // tile,),
            in_specs=[
                pl.BlockSpec((tile, in_dim), lambda i: (i, 0)),
                pl.BlockSpec((in_dim, hdim), lambda i: (0, 0)),
                pl.BlockSpec((hdim, 2 * H), lambda i: (0, 0)),
            ],
            out_specs=[
                pl.BlockSpec((tile, hdim), lambda i: (i, 0)),
                pl.BlockSpec((tile, 2 * H), lambda i: (i, 0)),
            ],
        ),
        compiler_params=cparams,
    )(h_f, w_all, a_pair)

    s_dst = s_pair[:, :H]                                    # (n_pad, H)
    s_src_t = jnp.transpose(s_pair[:, H:])                   # (H, n_pad)  tiny glue op

    # ---- kernel B: flash-style masked attention + aggregation ----
    attn = functools.partial(_attn_kernel, num_heads=H, head_dim=out_dim)
    out_cat = pl.pallas_call(
        attn,
        out_shape=jax.ShapeDtypeStruct((n_pad, hdim), jnp.float32),
        grid_spec=pltpu.PrefetchScalarGridSpec(
            num_scalar_prefetch=0,
            grid=(n_pad // tile, n_pad // tile),
            in_specs=[
                pl.BlockSpec((tile, H), lambda i, j: (i, 0)),
                pl.BlockSpec((H, tile), lambda i, j: (0, j)),
                pl.BlockSpec((tile, tile), lambda i, j: (i, j)),
                pl.BlockSpec((tile, hdim), lambda i, j: (j, 0)),
            ],
            out_specs=pl.BlockSpec((tile, hdim), lambda i, j: (i, 0)),
            scratch_shapes=[
                pltpu.VMEM((H, tile, 1), jnp.float32),       # running max
                pltpu.VMEM((H, tile, 1), jnp.float32),       # running denom
                pltpu.VMEM((H, tile, out_dim), jnp.float32),  # running accumulator
            ],
        ),
        compiler_params=pltpu.CompilerParams(
            dimension_semantics=("parallel", "arbitrary"),
            vmem_limit_bytes=vmem_limit_bytes,
        ),
    )(s_dst, s_src_t, adj_b, z_all)

    out_cat = out_cat[:N]                                    # drop padded rows

    if merge == "cat":
        return out_cat                                       # (N, H*out_dim)
    elif merge == "max":
        return jnp.max(out_cat.reshape(N, H, out_dim), axis=1)
    elif merge == "mean":
        # torch.mean(torch.stack(head_outs)) with no dim -> scalar mean of all elems
        return jnp.mean(out_cat)
    else:
        raise ValueError("Invalid `merge` value.")


def _reference(h, adj, fc_w, attn_w, merge="cat"):
    """Pure-JAX f32 reference mirroring the PyTorch/DGL semantics."""
    H, out_dim, _ = fc_w.shape
    mask = adj > 0
    outs = []
    for hd in range(H):
        z = h @ fc_w[hd].T
        a = attn_w[hd].reshape(-1)
        s_src = z @ a[:out_dim]
        s_dst = z @ a[out_dim:]
        e = s_dst[:, None] + s_src[None, :]                  # e[dst, src]
        e = jnp.where(e > 0, e, 0.01 * e)
        e = jnp.where(mask, e, -1e30)
        m = jnp.max(e, axis=-1, keepdims=True)
        p = jnp.where(mask, jnp.exp(e - m), 0.0)
        alpha = p / jnp.sum(p, axis=-1, keepdims=True)
        outs.append(alpha @ z)
    stacked = jnp.stack(outs)
    if merge == "cat":
        return jnp.concatenate(outs, axis=1)
    if merge == "max":
        return jnp.max(stacked, axis=0)
    if merge == "mean":
        return jnp.mean(stacked)
    raise ValueError("Invalid `merge` value.")


if __name__ == "__main__":
    N, IN_DIM, OUT_DIM, HEADS = 256, 16, 32, 4               # H*OUT_DIM = 128 (lane-dense)

    key = jax.random.PRNGKey(0)
    k_h, k_w, k_a = jax.random.split(key, 3)
    h = jax.random.normal(k_h, (N, IN_DIM), dtype=jnp.float32)
    fc_w = 0.1 * jax.random.normal(k_w, (HEADS, OUT_DIM, IN_DIM), dtype=jnp.float32)
    attn_w = 0.1 * jax.random.normal(k_a, (HEADS, 1, 2 * OUT_DIM), dtype=jnp.float32)

    # Deterministic graph: self-loops + a few "ring" edges, adj[dst, src].
    adj_np = np.zeros((N, N), dtype=np.float32)
    idx = np.arange(N)
    adj_np[idx, idx] = 1.0
    for off in (1, 5, 11, 64):
        adj_np[(idx + off) % N, idx] = 1.0
    adj = jnp.asarray(adj_np)

    # bf16 is used for z and the p @ z aggregation (f32 accumulation), hence 2e-2 tol.
    out = multi_head_gat(h, adj, fc_w, attn_w, merge="cat", tile=128)
    out = jax.block_until_ready(out)
    assert out.shape == (N, HEADS * OUT_DIM)
    np.testing.assert_allclose(np.asarray(out),
                               np.asarray(_reference(h, adj, fc_w, attn_w, merge="cat")),
                               rtol=2e-2, atol=2e-2)

    out_max = jax.block_until_ready(multi_head_gat(h, adj, fc_w, attn_w, merge="max"))
    np.testing.assert_allclose(np.asarray(out_max),
                               np.asarray(_reference(h, adj, fc_w, attn_w, merge="max")),
                               rtol=2e-2, atol=2e-2)

    out_mean = jax.block_until_ready(multi_head_gat(h, adj, fc_w, attn_w, merge="mean"))
    np.testing.assert_allclose(np.asarray(out_mean),
                               np.asarray(_reference(h, adj, fc_w, attn_w, merge="mean")),
                               rtol=2e-2, atol=2e-2)

    print("KERNEL_OK")
</pallas_src>

<mosaic_0001>
module attributes {stable_mosaic.version = 11 : i64} {
  func.func @_proj_kernel(%arg0: i32, %arg1: memref<128x16xf32, #tpu.memory_space<vmem>>, %arg2: memref<16x128xf32, #tpu.memory_space<vmem>>, %arg3: memref<128x8xf32, #tpu.memory_space<vmem>>, %arg4: memref<128x128xbf16, #tpu.memory_space<vmem>>, %arg5: memref<128x8xf32, #tpu.memory_space<vmem>>) attributes {dimension_semantics = [#tpu.dimension_semantics<parallel>], iteration_bounds = array<i64: 2>, scalar_prefetch = 0 : i64, scratch_operands = 0 : i64, tpu.core_type = #tpu.core_type<tc>, window_params = [{transform_indices = @transform_0, window_bounds = array<i64: 128, 16>}, {pipeline_mode = #tpu.pipeline_mode<synchronous>, transform_indices = @transform_1, window_bounds = array<i64: 16, 128>}, {pipeline_mode = #tpu.pipeline_mode<synchronous>, transform_indices = @transform_2, window_bounds = array<i64: 128, 8>}, {transform_indices = @transform_3, window_bounds = array<i64: 128, 128>}, {transform_indices = @transform_4, window_bounds = array<i64: 128, 8>}]} {
    %c0 = arith.constant 0 : index
    %c0_0 = arith.constant 0 : index
    %0 = vector.load %arg1[%c0, %c0_0] : memref<128x16xf32, #tpu.memory_space<vmem>>, vector<128x16xf32>
    %c0_1 = arith.constant 0 : index
    %c0_2 = arith.constant 0 : index
    %1 = vector.load %arg2[%c0_1, %c0_2] : memref<16x128xf32, #tpu.memory_space<vmem>>, vector<16x128xf32>
    %cst = arith.constant dense<0.000000e+00> : vector<128x128xf32>
    %2 = tpu.matmul %0, %1, %cst {dimension_numbers = #tpu.dot_dimension_numbers<[1], [0], [0], [1], [0, 0, 1, 1], [], []>} : vector<128x16xf32>, vector<16x128xf32>, vector<128x128xf32> -> vector<128x128xf32>
    %c0_3 = arith.constant 0 : index
    %c0_4 = arith.constant 0 : index
    %3 = vector.load %arg3[%c0_3, %c0_4] : memref<128x8xf32, #tpu.memory_space<vmem>>, vector<128x8xf32>
    %cst_5 = arith.constant dense<0.000000e+00> : vector<128x8xf32>
    %4 = tpu.matmul %2, %3, %cst_5 {dimension_numbers = #tpu.dot_dimension_numbers<[1], [0], [0], [1], [0, 0, 1, 1], [], []>} : vector<128x128xf32>, vector<128x8xf32>, vector<128x8xf32> -> vector<128x8xf32>
    %c0_6 = arith.constant 0 : index
    %c0_7 = arith.constant 0 : index
    %5 = vector.load %arg5[%c0_6, %c0_7] : memref<128x8xf32, #tpu.memory_space<vmem>>, vector<128x8xf32>
    tpu.vector_store %arg5[%c0_6, %c0_7], %4 {strides = array<i32>} : memref<128x8xf32, #tpu.memory_space<vmem>>, vector<128x8xf32>,
    %6 = arith.truncf %2 : vector<128x128xf32> to vector<128x128xbf16>
    %c0_8 = arith.constant 0 : index
    %c0_9 = arith.constant 0 : index
    %7 = vector.load %arg4[%c0_8, %c0_9] : memref<128x128xbf16, #tpu.memory_space<vmem>>, vector<128x128xbf16>
    tpu.vector_store %arg4[%c0_8, %c0_9], %6 {strides = array<i32>} : memref<128x128xbf16, #tpu.memory_space<vmem>>, vector<128x128xbf16>,
    return
  }
  func.func @transform_0(%arg0: i32) -> (i32, i32) {
    %c0_i32 = arith.constant 0 : i32
    %c0_i32_0 = arith.constant 0 : i32
    return %arg0, %c0_i32 : i32, i32
  }
  func.func @transform_1(%arg0: i32) -> (i32, i32) {
    %c0_i32 = arith.constant 0 : i32
    %c0_i32_0 = arith.constant 0 : i32
    %c0_i32_1 = arith.constant 0 : i32
    return %c0_i32, %c0_i32_0 : i32, i32
  }
  func.func @transform_2(%arg0: i32) -> (i32, i32) {
    %c0_i32 = arith.constant 0 : i32
    %c0_i32_0 = arith.constant 0 : i32
    %c0_i32_1 = arith.constant 0 : i32
    return %c0_i32, %c0_i32_0 : i32, i32
  }
  func.func @transform_3(%arg0: i32) -> (i32, i32) {
    %c0_i32 = arith.constant 0 : i32
    %c0_i32_0 = arith.constant 0 : i32
    return %arg0, %c0_i32 : i32, i32
  }
  func.func @transform_4(%arg0: i32) -> (i32, i32) {
    %c0_i32 = arith.constant 0 : i32
    %c0_i32_0 = arith.constant 0 : i32
    return %arg0, %c0_i32 : i32, i32
  }
}

</mosaic_0001>

<bundles_post_ra>
// kernel: tpu_custom_call.1
= control target key start
LH: loop header
LB: loop body
LE: loop exit
PB: predicated region body
PF: predicated region fallthrough
CT: control target
= control target key end

     0   :  { %10 = vsyncpa [#allocation3], 0  ;;  %s1471_s0 = inlined_call_operand.vmem [shape: f32[256,16], index: 0, kind: input, shape index: {}]   ;;  %s1472_s1 = inlined_call_operand.vmem [shape: f32[16,128], index: 1, kind: input, shape index: {}]   ;;  %s1473_s2 = inlined_call_operand.vmem [shape: f32[128,8], index: 2, kind: input, shape index: {}]   ;;  %s1474_s3 = inlined_call_operand.hbm [shape: bf16[256,128], index: 3, kind: output, shape index: {0}]   ;;  %s1475_s4 = inlined_call_operand.vmem [shape: f32[256,8], index: 4, kind: output, shape index: {1}]  }
   0x1   :  { %12 = vsyncpa [#allocation3 + $0x1], 0  ;;  %s1222_s15 = smov 0   ;;  %s1224_s16 = smov 0  }
   0x2   :  { %s1226_s17 = smov 0   ;;  %s1228_s18 = smov 0  }
   0x3 LB: > { %s1243_s19 = sadd.s32 4294967295, %s1192_s18   ;;  %s793_s20 = sadd.s32 4294967294, %s1192_s18   ;;  %s1192_s18 = sphi %s1228_s18, %s1481_s18   ;;  %s1188_s17 = sphi %s1226_s17, %s1480_s17   ;;  %s1184_s16 = sphi %s1224_s16, %s1479_s16   ;;  %s1180_s15 = sphi %s1222_s15, %s1478_s15  }
   0x4   : > { %s1247_s21 = sadd.s32 1, %s1192_s18   ;;  %s93_s22 = sadd.s32 1, %s1188_s17 }
   0x5   : > { %s90_s23 = ssub.s32 %s1192_s18, %s1247_s21  ;;  %p103_p0 = scmp.ne.s32.totalorder %s1188_s17, %s1184_s16 }
   0x6   : > { %p91_p1 = scmp.eq.s32.totalorder %s90_s23, 0  ;;  %p104_p2 = scmp.eq.s32.totalorder %s1243_s19, 1 }
   0x7   : > { %p109_p3 = scmp.ne.s32.totalorder %s1184_s16, %s1180_s15  ;;  %p110_p4 = scmp.eq.s32.totalorder %s793_s20, 1 }
   0x8   : > { %s1258_s24 = scalar_select %p91_p1, %s1188_s17, %s93_s22  }
   0x9   : > { %p1260_p5 = por %p104_p2, %p103_p0  ;;  %p1264_p6 = por %p110_p4, %p109_p3 }
   0xa   : > { %p796_p7 = scmp.ge.s32.totalorder %s1192_s18, 1  ;;  %p169_p8 = scmp.lt.s32.totalorder %s1192_s18, 3 }
   0xc   : > { %p170_p9 = pnand %p796_p7, %p169_p8 }
   0xd   : > { %v229_v0 = vld [vmem:[%s1472_s1] sm:$0xff] (!%p170_p9)  ;;  %v230_v1 = vld [vmem:[%s1472_s1 + $0x8] sm:$0xff] (!%p170_p9)  ;;  %s798_s5 = sshll.u32 (!%p170_p9), %s1243_s19, 4  ;;  %v427_v5 = vld [vmem:[%s1473_s2 + $0x10] sm:$0xff] (!%p170_p9)  ;;  %vm231_vm0 = vcmask (!%p170_p9), 130048   ;;  %s190_s12 = sand.u32 (!%p170_p9), 1, %s1184_s16  }
   0xe   : > { %173 = sbr.rel (%p170_p9) target bundleno = 482 (0x1e2), region = 32  ;;  %v425_v2 = vld [vmem:[%s1473_s2] sm:$0xff] (!%p170_p9)  ;;  %v1037_v3 = vpack.c.bf16 (!%p170_p9), %v230_v1, %v229_v0  ;;  %p201_p10 = scmp.lt.s32.totalorder (!%p170_p9), %s798_s5, 31  ;;  %v426_v4 = vld [vmem:[%s1473_s2 + $0x8] sm:$0xff] (!%p170_p9)  ;;  %v428_v6 = vld [vmem:[%s1473_s2 + $0x18] sm:$0xff] (!%p170_p9) }
   0xf   : > { %v1041_v7 = vpack.c.bf16 (!%p170_p9), %v426_v4, %v425_v2  ;;  %v1045_v8 = vpack.c.bf16 (!%p170_p9), %v428_v6, %v427_v5  ;;  %v429_v9 = vld [vmem:[%s1473_s2 + $0x20] sm:$0xff] (!%p170_p9)  ;;  %v430_v10 = vld [vmem:[%s1473_s2 + $0x28] sm:$0xff] (!%p170_p9)  ;;  %v431_v16 = vld [vmem:[%s1473_s2 + $0x30] sm:$0xff] (!%p170_p9)  ;;  %s797_s13 = sshll.u32 (!%p170_p9), %s190_s12, 6  ;;  %s1391_s30 = scalar_lea.sflag (!%p170_p9), [#allocation3], %s190_s12 }
  0x10   : > { %1038 = vmatprep.subr.bf16.mxu0 (!%p170_p9), %v1037_v3  ;;  %v1049_v14 = vpack.c.bf16 (!%p170_p9), %v430_v10, %v429_v9  ;;  %v432_v17 = vld [vmem:[%s1473_s2 + $0x38] sm:$0xff] (!%p170_p9)  ;;  %v433_v21 = vld [vmem:[%s1473_s2 + $0x40] sm:$0xff] (!%p170_p9)  ;;  %v434_v22 = vld [vmem:[%s1473_s2 + $0x48] sm:$0xff] (!%p170_p9)  ;;  %s1370_s20 = scalar_lea.vmem (!%p170_p9), [#allocation2], %s797_s13 }
  0x11   : > { %1040 = vmatpush3.bf16.msra.mxu0 (!%p170_p9), %v1037_v3  ;;  %1073 = vmatprep.subr.bf16.mxu1 (!%p170_p9), %v1041_v7  ;;  %v1053_v19 = vpack.c.bf16 (!%p170_p9), %v432_v17, %v431_v16  ;;  %v1057_v24 = vpack.c.bf16 (!%p170_p9), %v434_v22, %v433_v21  ;;  %v435_v26 = vld [vmem:[%s1473_s2 + $0x50] sm:$0xff] (!%p170_p9)  ;;  %v436_v27 = vld [vmem:[%s1473_s2 + $0x58] sm:$0xff] (!%p170_p9)  ;;  %v437_v31 = vld [vmem:[%s1473_s2 + $0x60] sm:$0xff] (!%p170_p9)  ;;  %s702_s22 = sshll.u32 (!%p170_p9), %s1370_s20, 4  ;;  %s1387_s22 = int_to_ptr.vmem [resolvable:$true] %s702_s22 }
  0x12   : > { %1042 = vmatprep.subr.bf16.mxu0 (!%p170_p9), %v1041_v7  ;;  %1081 = vmatpush3.bf16.msra.mxu1 (!%p170_p9), %v1041_v7  ;;  %v1061_v29 = vpack.c.bf16 (!%p170_p9), %v436_v27, %v435_v26  ;;  %v438_v32 = vld [vmem:[%s1473_s2 + $0x68] sm:$0xff] (!%p170_p9)  ;;  %v439_v36 = vld [vmem:[%s1473_s2 + $0x70] sm:$0xff] (!%p170_p9)  ;;  %v440_v37 = vld [vmem:[%s1473_s2 + $0x78] sm:$0xff] (!%p170_p9)  ;;  %s1130_s6 = scalar_lea.vmem (!%p170_p9), %s1387_s22, 1024 }
  0x13   : > { %1074 = vmatprep.subr.bf16.mxu1 (!%p170_p9), %v1045_v8  ;;  %v1065_v34 = vpack.c.bf16 (!%p170_p9), %v438_v32, %v437_v31  ;;  %v1069_v39 = vpack.c.bf16 (!%p170_p9), %v440_v37, %v439_v36  ;;  %p1131_p11 = scmp.ne.s32.totalorder (!%p170_p9), %s1387_s22, %s1130_s6 }
  0x15   : > { %s1483_s5 = smov (!%p201_p10, %s798_s5), 31  ;;  %p1132_p12 = pnand %p1131_p11, %p1260_p5 }
  0x16   : > { %s799_s14 = sshll.u32 %s1483_s5, 3  ;;  %1082 = vmatpush3.bf16.msra.mxu1 %v1045_v8 }
  0x17   : > { %s1297_s23 = scalar_lea.vmem %s1471_s0, %s799_s14  ;;  %1075 = vmatprep.subr.bf16.mxu1 %v1049_v14  ;;  %p1133_p13 = pneg %p1132_p12 }
  0x18   : > { %v213_v11 = vld [vmem:[%s1297_s23] sm:$0xff]  ;;  %v214_v12 = vld [vmem:[%s1297_s23 + $0x8] sm:$0xff]  ;;  %v215_v13 = vld [vmem:[%s1297_s23 + $0x10] sm:$0xff] }
  0x19   : > { %957 = vmatprep.mubr.msk.f32.mxu0 %vm231_vm0, %v213_v11  ;;  %v216_v15 = vld [vmem:[%s1297_s23 + $0x18] sm:$0xff]  ;;  %v217_v18 = vld [vmem:[%s1297_s23 + $0x20] sm:$0xff]  ;;  %v218_v20 = vld [vmem:[%s1297_s23 + $0x28] sm:$0xff] }
  0x1a   : > { %958 = vmatmul.mubr.msk.f32.vlgmr.msra.gmra.mrb[0].mxu0 %vm231_vm0, %v214_v12  ;;  %1083 = vmatpush3.bf16.msra.mxu1 %v1049_v14  ;;  %v219_v23 = vld [vmem:[%s1297_s23 + $0x30] sm:$0xff]  ;;  %v220_v25 = vld [vmem:[%s1297_s23 + $0x38] sm:$0xff]  ;;  %v221_v28 = vld [vmem:[%s1297_s23 + $0x40] sm:$0xff] }
  0x1b   : > { %960 = vmatprep.mubr.msk.f32.mxu0 %vm231_vm0, %v215_v13  ;;  %1044 = vmatpush3.bf16.msra.mxu0 %v1041_v7  ;;  %v222_v30 = vld [vmem:[%s1297_s23 + $0x48] sm:$0xff]  ;;  %v223_v33 = vld [vmem:[%s1297_s23 + $0x50] sm:$0xff]  ;;  %v224_v35 = vld [vmem:[%s1297_s23 + $0x58] sm:$0xff] }
  0x1c   : > { %1046 = vmatprep.subr.bf16.mxu0 %v1045_v8  ;;  %1076 = vmatprep.subr.bf16.mxu1 %v1053_v19  ;;  %v225_v38 = vld [vmem:[%s1297_s23 + $0x60] sm:$0xff]  ;;  %v226_v40 = vld [vmem:[%s1297_s23 + $0x68] sm:$0xff]  ;;  %v227_v41 = vld [vmem:[%s1297_s23 + $0x70] sm:$0xff] }
  0x1d   : > { %v228_v42 = vld [vmem:[%s1297_s23 + $0x78] sm:$0xff]  ;;  %s855_s23 = sshll.u32 %s1243_s19, 10  ;;  %s1194_s19 = smov [#allocation2]  }
  0x1e   : > { %961 = vmatmul.mubr.msk.f32.gmra.mrb[2].mxu0 %vm231_vm0, %v216_v15  ;;  %1084 = vmatpush3.bf16.msra.mxu1 %v1053_v19  ;;  %s1385_s29 = scalar_lea.hbm %s1474_s3, %s855_s23  ;;  %s1134_s7 = sshll.u32 %s1194_s19, 4  ;;  %s1135_s7 = int_to_ptr.vmem [resolvable:$false] %s1134_s7 }
  0x1f   : > { %963 = vmatprep.mubr.msk.f32.mxu0 %vm231_vm0, %v217_v18  ;;  %1048 = vmatpush3.bf16.msra.mxu0 %v1045_v8  ;;  %s1136_s8 = scalar_lea.vmem %s1135_s7, 2048  ;;  %p1137_p0 = scmp.lt.s32.totalorder %s1387_s22, %s1135_s7 }
  0x20   : > { %1050 = vmatprep.subr.bf16.mxu0 %v1049_v14  ;;  %1077 = vmatprep.subr.bf16.mxu1 %v1057_v24  ;;  %p1138_p1 = scmp.lt.s32.totalorder %s1136_s8, %s1130_s6 }
  0x22   : > { %964 = vmatmul.mubr.msk.f32.gmra.mrb[4].mxu0 %vm231_vm0, %v218_v20  ;;  %1085 = vmatpush3.bf16.msra.mxu1 %v1057_v24  ;;  %p1139_p2 = por %p1138_p1, %p1137_p0 }
  0x23   : > { %966 = vmatprep.mubr.msk.f32.mxu0 %vm231_vm0, %v219_v23  ;;  %1052 = vmatpush3.bf16.msra.mxu0 %v1049_v14 }
  0x24   : > { %1054 = vmatprep.subr.bf16.mxu0 %v1053_v19  ;;  %1078 = vmatprep.subr.bf16.mxu1 %v1061_v29  ;;  %p1140_p3 = pnand %p1139_p2, %p1133_p13 }
  0x26   : > { %967 = vmatmul.mubr.msk.f32.gmra.mrb[6].mxu0 %vm231_vm0, %v220_v25  ;;  %1086 = vmatpush3.bf16.msra.mxu1 %v1061_v29 }
  0x27   : > { %969 = vmatprep.mubr.msk.f32.mxu0 %vm231_vm0, %v221_v28  ;;  %1056 = vmatpush3.bf16.msra.mxu0 %v1053_v19 }
  0x28   : > { %1058 = vmatprep.subr.bf16.mxu0 %v1057_v24  ;;  %1079 = vmatprep.subr.bf16.mxu1 %v1065_v34 }
  0x2a   : > { %970 = vmatmul.mubr.msk.f32.gmra.mrb[8].mxu0 %vm231_vm0, %v222_v30  ;;  %1087 = vmatpush3.bf16.msra.mxu1 %v1065_v34 }
  0x2b   : > { %972 = vmatprep.mubr.msk.f32.mxu0 %vm231_vm0, %v223_v33  ;;  %1060 = vmatpush3.bf16.msra.mxu0 %v1057_v24 }
  0x2c   : > { %1062 = vmatprep.subr.bf16.mxu0 %v1061_v29  ;;  %1080 = vmatprep.subr.bf16.mxu1 %v1069_v39 }
  0x2e   : > { %973 = vmatmul.mubr.msk.f32.gmra.mrb[10].mxu0 %vm231_vm0, %v224_v35  ;;  %1088 = vmatpush3.bf16.msra.mxu1 %v1069_v39 }
  0x2f   : > { %975 = vmatprep.mubr.msk.f32.mxu0 %vm231_vm0, %v225_v38  ;;  %1064 = vmatpush3.bf16.msra.mxu0 %v1061_v29 }
  0x30   : > { %1066 = vmatprep.subr.bf16.mxu0 %v1065_v34 }
  0x32   : > { %976 = vmatmul.mubr.msk.f32.gmra.mrb[12].mxu0 %vm231_vm0, %v226_v40 }
  0x33   : > { %978 = vmatprep.mubr.msk.f32.mxu0 %vm231_vm0, %v227_v41  ;;  %1068 = vmatpush3.bf16.msra.mxu0 %v1065_v34 }
  0x34   : > { %1070 = vmatprep.subr.bf16.mxu0 %v1069_v39 }
  0x36   : > { %979 = vmatmul.mubr.msk.f32.gmra.mrb[14].mxu0 %vm231_vm0, %v228_v42 }
  0x37   : > { %1072 = vmatpush3.bf16.msra.mxu0 %v1069_v39 }
  0xed   : > { %v959_v43 = vpop.f32.mrb[0].mxu0 }
  0xee   : > { %v346_v44 = vpop.f32.mrb[1].mxu0 }
  0xef   : > { %v859_v45 = vpack.c.bf16 %v959_v43, %v346_v44  ;;  %1013 = vmatprep.mubr.f32.mxu0 %v346_v44 }
  0xf0   : > { %1014 = vmatmul.mubr.f32.vlgmr.msra.gmra.mrb[16].mxu0 %v959_v43 }
  0xf1   : > { %860 = vst [vmem:[%s1370_s20] sm:$0xff] %v859_v45   ;;  %v962_v46 = vpop.f32.mrb[2].mxu0 }
  0xf2   : > { %v356_v47 = vpop.f32.mrb[3].mxu0 }
  0xf3   : > { %v864_v48 = vpack.c.bf16 %v962_v46, %v356_v47  ;;  %1016 = vmatprep.mubr.f32.mxu0 %v356_v47 }
  0xf4   : > { %1017 = vmatmul.mubr.f32.gmra.mrb[18].mxu0 %v962_v46 }
  0xf5   : > { %896 = vst [vmem:[%s1370_s20 + $0x8] sm:$0xff] %v864_v48   ;;  %v965_v49 = vpop.f32.mrb[4].mxu0 }
  0xf6   : > { %v366_v50 = vpop.f32.mrb[5].mxu0 }
  0xf7   : > { %v869_v51 = vpack.c.bf16 %v965_v49, %v366_v50  ;;  %1019 = vmatprep.mubr.f32.mxu0 %v366_v50 }
  0xf8   : > { %1020 = vmatmul.mubr.f32.gmra.mrb[20].mxu0 %v965_v49 }
  0xf9   : > { %897 = vst [vmem:[%s1370_s20 + $0x10] sm:$0xff] %v869_v51   ;;  %v968_v52 = vpop.f32.mrb[6].mxu0 }
  0xfa   : > { %v376_v53 = vpop.f32.mrb[7].mxu0 }
  0xfb   : > { %v874_v54 = vpack.c.bf16 %v968_v52, %v376_v53  ;;  %1022 = vmatprep.mubr.f32.mxu1 %v376_v53 }
  0xfc   : > { %1023 = vmatmul.mubr.f32.vlgmr.msra.gmra.mrb[0].mxu1 %v968_v52 }
  0xfd   : > { %898 = vst [vmem:[%s1370_s20 + $0x18] sm:$0xff] %v874_v54   ;;  %v971_v55 = vpop.f32.mrb[8].mxu0 }
  0xfe   : > { %v386_v56 = vpop.f32.mrb[9].mxu0 }
  0xff   : > { %v879_v57 = vpack.c.bf16 %v971_v55, %v386_v56  ;;  %1025 = vmatprep.mubr.f32.mxu1 %v386_v56 }
 0x100   : > { %1026 = vmatmul.mubr.f32.gmra.mrb[2].mxu1 %v971_v55 }
 0x101   : > { %899 = vst [vmem:[%s1370_s20 + $0x20] sm:$0xff] %v879_v57   ;;  %v974_v58 = vpop.f32.mrb[10].mxu0 }
 0x102   : > { %v396_v59 = vpop.f32.mrb[11].mxu0 }
 0x103   : > { %v884_v60 = vpack.c.bf16 %v974_v58, %v396_v59  ;;  %1028 = vmatprep.mubr.f32.mxu1 %v396_v59 }
 0x104   : > { %1029 = vmatmul.mubr.f32.gmra.mrb[4].mxu1 %v974_v58 }
 0x105   : > { %900 = vst [vmem:[%s1370_s20 + $0x28] sm:$0xff] %v884_v60   ;;  %v977_v61 = vpop.f32.mrb[12].mxu0 }
 0x106   : > { %v406_v62 = vpop.f32.mrb[13].mxu0 }
 0x107   : > { %v889_v63 = vpack.c.bf16 %v977_v61, %v406_v62  ;;  %1031 = vmatprep.mubr.f32.mxu1 %v406_v62 }
 0x108   : > { %1032 = vmatmul.mubr.f32.gmra.mrb[6].mxu1 %v977_v61 }
 0x109   : > { %901 = vst [vmem:[%s1370_s20 + $0x30] sm:$0xff] %v889_v63   ;;  %v980_v0 = vpop.f32.mrb[14].mxu0 }
 0x10a   : > { %v416_v1 = vpop.f32.mrb[15].mxu0 }
 0x10b   : > { %v894_v2 = vpack.c.bf16 %v980_v0, %v416_v1  ;;  %1034 = vmatprep.mubr.f32.mxu1 %v416_v1 }
 0x10c   : > { %1035 = vmatmul.mubr.f32.gmra.mrb[8].mxu1 %v980_v0 }
 0x10d   : > { %902 = vst [vmem:[%s1370_s20 + $0x38] sm:$0xff] %v894_v2  }
 0x10e   : > { %1143 = shalt.err (!%p1140_p3)
}
 0x10f   : > { %s1144_s9 = scalar_lea.hbm %s1385_s29, 1024  ;;  %s1148_s12 = scalar_lea.hbm %s1474_s3, 2048 }
 0x110   : > { %p1145_p4 = scmp.ne.s32.totalorder %s1385_s29, %s1144_s9  ;;  %p1149_p9 = scmp.lt.u32.totalorder %s1385_s29, %s1474_s3 }
 0x111   : > { %p1150_p10 = scmp.lt.u32.totalorder %s1148_s12, %s1144_s9  ;;  %p1152_p12 = scmp.lt.u32.totalorder %s1144_s9, %s1385_s29 }
 0x112   : > { %p1146_p7 = pnand %p1145_p4, %p1260_p5 }
 0x113   : > { %p1151_p11 = por %p1150_p10, %p1149_p9 }
 0x114   : > { %p1147_p8 = pneg %p1146_p7 }
 0x115   : > { %p1153_p13 = por %p1152_p12, %p1151_p11 }
 0x117   : > { %p1154_p0 = pnand %p1153_p13, %p1147_p8 }
 0x119   : > { %1157 = shalt.err (!%p1154_p0)
}
 0x11a   : > { %s1195_s23 = smov 64   ;;  %s1196_s27 = smov 4   ;;  %vm586_vm1 = vcmask 64512  }
 0x11b   : > { %1089 = dma.vmem_to_hbm [thread:$0]  (%p1260_p5), %s1387_s22, 1024, %s1385_s29, %s1391_s30, %s1195_s23, %s1195_s23, %s1196_s27  }
 0x11c   : > { %s1420_s19 = scalar_lea.vmem %s1475_s4, %s799_s14 }
 0x1c3   : > { %v1015_v3 = vpop.f32.mrb[16].mxu0 }
 0x1c4   : > { %588 = vst.msk [vmem:[%s1420_s19 + $0x8] sm:$0xff] %vm586_vm1, %v1015_v3  ;;  %v507_v4 = vpop.f32.mrb[17].mxu0 }
 0x1c5   : > { %587 = vst.msk [vmem:[%s1420_s19] sm:$0xff] %vm586_vm1, %v507_v4 }
 0x1c7   : > { %v1018_v5 = vpop.f32.mrb[18].mxu0 }
 0x1c8   : > { %590 = vst.msk [vmem:[%s1420_s19 + $0x18] sm:$0xff] %vm586_vm1, %v1018_v5  ;;  %v517_v6 = vpop.f32.mrb[19].mxu0 }
 0x1c9   : > { %589 = vst.msk [vmem:[%s1420_s19 + $0x10] sm:$0xff] %vm586_vm1, %v517_v6 }
 0x1cb   : > { %v1021_v7 = vpop.f32.mrb[20].mxu0 }
 0x1cc   : > { %592 = vst.msk [vmem:[%s1420_s19 + $0x28] sm:$0xff] %vm586_vm1, %v1021_v7  ;;  %v527_v8 = vpop.f32.mrb[21].mxu0 }
 0x1cd   : > { %591 = vst.msk [vmem:[%s1420_s19 + $0x20] sm:$0xff] %vm586_vm1, %v527_v8 }
 0x1cf   : > { %v1024_v9 = vpop.f32.mrb[0].mxu1 }
 0x1d0   : > { %594 = vst.msk [vmem:[%s1420_s19 + $0x38] sm:$0xff] %vm586_vm1, %v1024_v9  ;;  %v537_v10 = vpop.f32.mrb[1].mxu1 }
 0x1d1   : > { %593 = vst.msk [vmem:[%s1420_s19 + $0x30] sm:$0xff] %vm586_vm1, %v537_v10 }
 0x1d3   : > { %v1027_v11 = vpop.f32.mrb[2].mxu1 }
 0x1d4   : > { %596 = vst.msk [vmem:[%s1420_s19 + $0x48] sm:$0xff] %vm586_vm1, %v1027_v11  ;;  %v547_v12 = vpop.f32.mrb[3].mxu1 }
 0x1d5   : > { %595 = vst.msk [vmem:[%s1420_s19 + $0x40] sm:$0xff] %vm586_vm1, %v547_v12 }
 0x1d7   : > { %v1030_v13 = vpop.f32.mrb[4].mxu1 }
 0x1d8   : > { %598 = vst.msk [vmem:[%s1420_s19 + $0x58] sm:$0xff] %vm586_vm1, %v1030_v13  ;;  %v557_v14 = vpop.f32.mrb[5].mxu1 }
 0x1d9   : > { %597 = vst.msk [vmem:[%s1420_s19 + $0x50] sm:$0xff] %vm586_vm1, %v557_v14 }
 0x1db   : > { %v1033_v15 = vpop.f32.mrb[6].mxu1 }
 0x1dc   : > { %600 = vst.msk [vmem:[%s1420_s19 + $0x68] sm:$0xff] %vm586_vm1, %v1033_v15  ;;  %v567_v16 = vpop.f32.mrb[7].mxu1 }
 0x1dd   : > { %599 = vst.msk [vmem:[%s1420_s19 + $0x60] sm:$0xff] %vm586_vm1, %v567_v16 }
 0x1df   : > { %v1036_v17 = vpop.f32.mrb[8].mxu1 }
 0x1e0   : > { %602 = vst.msk [vmem:[%s1420_s19 + $0x78] sm:$0xff] %vm586_vm1, %v1036_v17  ;;  %v577_v18 = vpop.f32.mrb[9].mxu1 }
 0x1e1   : > { %601 = vst.msk [vmem:[%s1420_s19 + $0x70] sm:$0xff] %vm586_vm1, %v577_v18 }
 0x1e2 PF: > { %p1095_p5 = scmp.ge.s32.totalorder %s1192_s18, 2  ;;  %s721_s25 = sand.u32 1, %s1180_s15  }
 0x1e3   : > { %s722_s5 = scalar_lea.sflag [#allocation3], %s721_s25 }
 0x1e4   : > { %p1092_p1 = pnand %p1095_p5, %p1264_p6 }
 0x1e6   : > { %1175 = dma.done.wait (!%p1092_p1), %s722_s5, 1024  }
 0x1e7   : > { %1177 = vsyncadd (!%p1092_p1), %s722_s5, 4294966272  ;;  %p15_p2 = scmp.ge.s32.totalorder %s1247_s21, 4   ;;  %s1478_s15 = smov %s1184_s16 }
 0x1e8   : > { %s1479_s16 = smov %s1188_s17  ;;  %s1480_s17 = smov %s1258_s24 }
 0x1e9   : > { %s1481_s18 = smov %s1247_s21  ;;  %17 = sbr.rel (!%p15_p2) target bundleno = 3 (0x3), region = 79 }
 0x1f0   :  { %735 = vsyncpa [#allocation3], 1 }
 0x1f1   :  { %737 = vsyncpa [#allocation3 + $0x1], 1 }

</bundles_post_ra>
